<compile_context>
chip_gen: v7x
topology: tpu7x:2x2x1
jax: 0.10.0
libtpu: 0.0.40
codegen_flags: <defaults>
</compile_context>

<pallas_src>
import functools

import jax
import jax.numpy as jnp
from jax.experimental import pallas as pl
from jax.experimental.pallas import tpu as pltpu


LANES = 128


def _device_kind():
    try:
        return jax.devices()[0].device_kind.lower()
    except Exception:
        return ""


def _is_v7x(kind):
    return ("v7" in kind) or ("7x" in kind)


def _is_v5e(kind):
    return ("v5e" in kind) or ("v5 lite" in kind) or ("v5lite" in kind)


def _dice_kernel(x_ref, t_ref, out_ref, acc_inter_ref, acc_denom_ref, *,
                 block_rows, steps, total_blocks, full_blocks, partial_rows):
    c = pl.program_id(0)   # shard (parallel; >1 only on v7x)
    i = pl.program_id(1)   # reduction step (arbitrary)
    block_idx = c * steps + i

    @pl.when(i == 0)
    def _():
        acc_inter_ref[...] = jnp.zeros_like(acc_inter_ref)
        acc_denom_ref[...] = jnp.zeros_like(acc_denom_ref)

    def _accumulate(mask_rows=None):
        xf = x_ref[...].astype(jnp.float32)
        tf = t_ref[...].astype(jnp.float32)
        # sigmoid(x) = 0.5 * tanh(0.5 * x) + 0.5  -> one EUP push per vreg.
        xf = 0.5 * jnp.tanh(0.5 * xf) + 0.5
        if mask_rows is not None:
            row = jax.lax.broadcasted_iota(jnp.int32, (block_rows, LANES), 0)
            valid = row < mask_rows
            xf = jnp.where(valid, xf, 0.0)
            tf = jnp.where(valid, tf, 0.0)
        # Fold into (8, 128) accumulators with pure vreg-wise VALU adds
        # (leading-axis sum over whole vregs; no XLU, no accumulator vst/vld
        # per input vreg).
        prod = (xf * tf).reshape(block_rows // 8, 8, LANES)
        sums = (xf + tf).reshape(block_rows // 8, 8, LANES)
        acc_inter_ref[...] += jnp.sum(prod, axis=0)
        acc_denom_ref[...] += jnp.sum(sums, axis=0)

    # Fast path: fully-populated real blocks -- no mask at all.
    @pl.when(block_idx < full_blocks)
    def _():
        _accumulate()

    # Masked path: only the single genuinely-partial final block.
    if partial_rows:
        @pl.when(block_idx == total_blocks - 1)
        def _():
            _accumulate(mask_rows=partial_rows)

    # block_idx >= total_blocks (clamped duplicate from an uneven 2-shard
    # split) matches neither branch and is skipped entirely.

    @pl.when(i == steps - 1)
    def _():
        # Lane-dense (8, 128) partials; the tiny cross-lane reduction happens
        # in the wrapper.
        out_ref[0, 0, :, :] = acc_inter_ref[...]
        out_ref[0, 1, :, :] = acc_denom_ref[...]


def dice_loss(inputs, targets, smooth=0.0001):
    """Pallas TPU implementation of DiceLoss.forward."""
    x = inputs.reshape(-1)
    t = targets.reshape(-1)
    n = x.shape[0]
    n_main = (n // LANES) * LANES

    # Ragged tail (< 128 elements): plain JAX, no full-array copy.
    if n_main < n:
        xt = jax.nn.sigmoid(x[n_main:].astype(jnp.float32))
        tt = t[n_main:].astype(jnp.float32)
        tail_inter = jnp.sum(xt * tt)
        tail_denom = jnp.sum(xt) + jnp.sum(tt)
    else:
        tail_inter = jnp.float32(0.0)
        tail_denom = jnp.float32(0.0)

    if n_main == 0:
        inter = tail_inter
        denom = tail_denom
    else:
        rows = n_main // LANES

        # Round block rows to the sublane packing factor of the narrowest
        # input dtype (f32 -> 8, bf16 -> 16, int8/fp8 -> 32).
        pack = max(8 * max(1, 4 // jnp.dtype(x.dtype).itemsize),
                   8 * max(1, 4 // jnp.dtype(t.dtype).itemsize),
                   8)

        kind = _device_kind()
        max_block_rows = 4096 if _is_v5e(kind) else 8192
        block_rows = min(max_block_rows, pl.cdiv(rows, pack) * pack)
        total_blocks = pl.cdiv(rows, block_rows)

        # Two shards only where a second TensorCore exists (v7x); on 1-TC
        # chips the shard axis would just be a serial loop with extra DMA.
        num_shards = 2 if (_is_v7x(kind) and total_blocks >= 2) else 1
        steps = pl.cdiv(total_blocks, num_shards)

        partial_rows = rows - (total_blocks - 1) * block_rows
        if partial_rows == block_rows:
            partial_rows = 0
        full_blocks = total_blocks - (1 if partial_rows else 0)

        # Guard: padded grid coverage must reach all real rows, and any
        # clamped duplicate block must be skippable by the pl.when gates.
        assert num_shards * steps * block_rows >= rows
        assert full_blocks + (1 if partial_rows else 0) == total_blocks

        x2 = x[:n_main].reshape(rows, LANES)
        t2 = t[:n_main].reshape(rows, LANES)

        # Clamp the block index for the DMA (keeps it in bounds even for the
        # duplicated last step of an uneven shard split); that block is then
        # skipped in-kernel.
        def in_idx(c, i):
            return (jnp.minimum(c * steps + i, total_blocks - 1), 0)

        kernel = functools.partial(
            _dice_kernel,
            block_rows=block_rows,
            steps=steps,
            total_blocks=total_blocks,
            full_blocks=full_blocks,
            partial_rows=partial_rows,
        )

        # 2 inputs x 2 pipeline buffers + accumulators / output / slack.
        vmem_limit = int(2 * block_rows * LANES *
                         (jnp.dtype(x2.dtype).itemsize +
                          jnp.dtype(t2.dtype).itemsize) + (4 << 20))

        out = pl.pallas_call(
            kernel,
            out_shape=jax.ShapeDtypeStruct((num_shards, 2, 8, LANES),
                                           jnp.float32),
            grid_spec=pltpu.PrefetchScalarGridSpec(
                num_scalar_prefetch=0,
                grid=(num_shards, steps),
                in_specs=[
                    pl.BlockSpec((block_rows, LANES), in_idx),
                    pl.BlockSpec((block_rows, LANES), in_idx),
                ],
                out_specs=pl.BlockSpec((1, 2, 8, LANES),
                                       lambda c, i: (c, 0, 0, 0)),
                scratch_shapes=[
                    pltpu.VMEM((8, LANES), jnp.float32),
                    pltpu.VMEM((8, LANES), jnp.float32),
                ],
            ),
            compiler_params=pltpu.CompilerParams(
                dimension_semantics=("parallel", "arbitrary"),
                vmem_limit_bytes=vmem_limit,
            ),
        )(x2, t2)

        inter = jnp.sum(out[:, 0]) + tail_inter
        denom = jnp.sum(out[:, 1]) + tail_denom

    dice = (2.0 * inter + smooth) / (denom + smooth)
    return 1.0 - dice


def dice_loss_ref(inputs, targets, smooth=0.0001):
    x = jax.nn.sigmoid(inputs.astype(jnp.float32)).reshape(-1)
    t = targets.astype(jnp.float32).reshape(-1)
    inter = jnp.sum(x * t)
    dice = (2.0 * inter + smooth) / (jnp.sum(x) + jnp.sum(t) + smooth)
    return 1.0 - dice


if __name__ == "__main__":
    key = jax.random.PRNGKey(0)
    k1, k2 = jax.random.split(key)
    # typical segmentation use: NCHW logits + binary mask
    inputs = jax.random.normal(k1, (2, 4, 16, 16), dtype=jnp.float32)
    targets = (jax.random.uniform(k2, (2, 4, 16, 16)) > 0.5).astype(jnp.float32)

    dice_fn = jax.jit(dice_loss)
    out = jax.block_until_ready(dice_fn(inputs, targets))

    ref = jax.block_until_ready(dice_loss_ref(inputs, targets))
    assert jnp.allclose(out, ref, atol=1e-5, rtol=1e-5), (out, ref)
    print("KERNEL_OK")
</pallas_src>

<mosaic_0001>
module attributes {stable_mosaic.version = 11 : i64} {
  func.func @_dice_kernel(%arg0: i32, %arg1: i32, %arg2: memref<16x128xf32, #tpu.memory_space<vmem>>, %arg3: memref<16x128xf32, #tpu.memory_space<vmem>>, %arg4: memref<1x2x8x128xf32, #tpu.memory_space<vmem>>, %arg5: memref<8x128xf32, #tpu.memory_space<vmem>>, %arg6: memref<8x128xf32, #tpu.memory_space<vmem>>) attributes {dimension_semantics = [#tpu.dimension_semantics<parallel>, #tpu.dimension_semantics<arbitrary>], iteration_bounds = array<i64: 1, 1>, scalar_prefetch = 0 : i64, scratch_operands = 2 : i64, tpu.core_type = #tpu.core_type<tc>, window_params = [{transform_indices = @transform_0, window_bounds = array<i64: 16, 128>}, {transform_indices = @transform_1, window_bounds = array<i64: 16, 128>}, {transform_indices = @transform_2, window_bounds = array<i64: 1, 2, 8, 128>}]} {
    %c1_i32 = arith.constant 1 : i32
    %0 = arith.muli %arg0, %c1_i32 : i32
    %1 = arith.addi %0, %arg1 : i32
    %c0_i32 = arith.constant 0 : i32
    %2 = arith.cmpi eq, %arg1, %c0_i32 : i32
    %3 = arith.extui %2 : i1 to i32
    %c0_i32_0 = arith.constant 0 : i32
    %4 = arith.cmpi ne, %3, %c0_i32_0 : i32
    scf.if %4 {
      %cst = arith.constant 0.000000e+00 : f32
      %11 = vector.broadcast %cst : f32 to vector<8x128xf32>
      %c0 = arith.constant 0 : index
      %c0_5 = arith.constant 0 : index
      %12 = vector.load %arg5[%c0, %c0_5] : memref<8x128xf32, #tpu.memory_space<vmem>>, vector<8x128xf32>
      tpu.vector_store %arg5[%c0, %c0_5], %11 {strides = array<i32>} : memref<8x128xf32, #tpu.memory_space<vmem>>, vector<8x128xf32>,
      %cst_6 = arith.constant 0.000000e+00 : f32
      %13 = vector.broadcast %cst_6 : f32 to vector<8x128xf32>
      %c0_7 = arith.constant 0 : index
      %c0_8 = arith.constant 0 : index
      %14 = vector.load %arg6[%c0_7, %c0_8] : memref<8x128xf32, #tpu.memory_space<vmem>>, vector<8x128xf32>
      tpu.vector_store %arg6[%c0_7, %c0_8], %13 {strides = array<i32>} : memref<8x128xf32, #tpu.memory_space<vmem>>, vector<8x128xf32>,
    } else {
    }
    %c1_i32_1 = arith.constant 1 : i32
    %5 = arith.cmpi slt, %1, %c1_i32_1 : i32
    %6 = arith.extui %5 : i1 to i32
    %c0_i32_2 = arith.constant 0 : i32
    %7 = arith.cmpi ne, %6, %c0_i32_2 : i32
    scf.if %7 {
      %c0 = arith.constant 0 : index
      %c0_5 = arith.constant 0 : index
      %11 = vector.load %arg2[%c0, %c0_5] : memref<16x128xf32, #tpu.memory_space<vmem>>, vector<16x128xf32>
      %c0_6 = arith.constant 0 : index
      %c0_7 = arith.constant 0 : index
      %12 = vector.load %arg3[%c0_6, %c0_7] : memref<16x128xf32, #tpu.memory_space<vmem>>, vector<16x128xf32>
      %cst = arith.constant 5.000000e-01 : f32
      %13 = vector.broadcast %cst : f32 to vector<16x128xf32>
      %14 = arith.mulf %13, %11 : vector<16x128xf32>
      %15 = math.tanh %14 : vector<16x128xf32>
      %cst_8 = arith.constant 5.000000e-01 : f32
      %16 = vector.broadcast %cst_8 : f32 to vector<16x128xf32>
      %17 = arith.mulf %16, %15 : vector<16x128xf32>
      %cst_9 = arith.constant 5.000000e-01 : f32
      %18 = vector.broadcast %cst_9 : f32 to vector<16x128xf32>
      %19 = arith.addf %17, %18 : vector<16x128xf32>
      %20 = arith.mulf %19, %12 : vector<16x128xf32>
      %21 = vector.shape_cast %20 : vector<16x128xf32> to vector<2x8x128xf32>
      %22 = arith.addf %19, %12 : vector<16x128xf32>
      %23 = vector.shape_cast %22 : vector<16x128xf32> to vector<2x8x128xf32>
      %c0_10 = arith.constant 0 : index
      %c0_11 = arith.constant 0 : index
      %24 = vector.load %arg5[%c0_10, %c0_11] : memref<8x128xf32, #tpu.memory_space<vmem>>, vector<8x128xf32>
      %cst_12 = arith.constant dense<0.000000e+00> : vector<8x128xf32>
      %25 = vector.multi_reduction <add>, %21, %cst_12 [0] : vector<2x8x128xf32> to vector<8x128xf32>
      %26 = arith.addf %24, %25 : vector<8x128xf32>
      %c0_13 = arith.constant 0 : index
      %c0_14 = arith.constant 0 : index
      %27 = vector.load %arg5[%c0_13, %c0_14] : memref<8x128xf32, #tpu.memory_space<vmem>>, vector<8x128xf32>
      tpu.vector_store %arg5[%c0_13, %c0_14], %26 {strides = array<i32>} : memref<8x128xf32, #tpu.memory_space<vmem>>, vector<8x128xf32>,
      %c0_15 = arith.constant 0 : index
      %c0_16 = arith.constant 0 : index
      %28 = vector.load %arg6[%c0_15, %c0_16] : memref<8x128xf32, #tpu.memory_space<vmem>>, vector<8x128xf32>
      %cst_17 = arith.constant dense<0.000000e+00> : vector<8x128xf32>
      %29 = vector.multi_reduction <add>, %23, %cst_17 [0] : vector<2x8x128xf32> to vector<8x128xf32>
      %30 = arith.addf %28, %29 : vector<8x128xf32>
      %c0_18 = arith.constant 0 : index
      %c0_19 = arith.constant 0 : index
      %31 = vector.load %arg6[%c0_18, %c0_19] : memref<8x128xf32, #tpu.memory_space<vmem>>, vector<8x128xf32>
      tpu.vector_store %arg6[%c0_18, %c0_19], %30 {strides = array<i32>} : memref<8x128xf32, #tpu.memory_space<vmem>>, vector<8x128xf32>,
    } else {
    }
    %c0_i32_3 = arith.constant 0 : i32
    %8 = arith.cmpi eq, %arg1, %c0_i32_3 : i32
    %9 = arith.extui %8 : i1 to i32
    %c0_i32_4 = arith.constant 0 : i32
    %10 = arith.cmpi ne, %9, %c0_i32_4 : i32
    scf.if %10 {
      %c0 = arith.constant 0 : index
      %c0_5 = arith.constant 0 : index
      %11 = vector.load %arg5[%c0, %c0_5] : memref<8x128xf32, #tpu.memory_space<vmem>>, vector<8x128xf32>
      %c0_6 = arith.constant 0 : index
      %c0_7 = arith.constant 0 : index
      %c0_8 = arith.constant 0 : index
      %c0_9 = arith.constant 0 : index
      %12 = vector.load %arg4[%c0_6, %c0_7, %c0_8, %c0_9] : memref<1x2x8x128xf32, #tpu.memory_space<vmem>>, vector<1x1x8x128xf32>
      %13 = vector.shape_cast %12 : vector<1x1x8x128xf32> to vector<8x128xf32>
      %14 = vector.shape_cast %11 : vector<8x128xf32> to vector<1x1x8x128xf32>
      tpu.vector_store %arg4[%c0_6, %c0_7, %c0_8, %c0_9], %14 {strides = array<i32>} : memref<1x2x8x128xf32, #tpu.memory_space<vmem>>, vector<1x1x8x128xf32>,
      %c0_10 = arith.constant 0 : index
      %c0_11 = arith.constant 0 : index
      %15 = vector.load %arg6[%c0_10, %c0_11] : memref<8x128xf32, #tpu.memory_space<vmem>>, vector<8x128xf32>
      %c0_12 = arith.constant 0 : index
      %c1 = arith.constant 1 : index
      %c0_13 = arith.constant 0 : index
      %c0_14 = arith.constant 0 : index
      %16 = vector.load %arg4[%c0_12, %c1, %c0_13, %c0_14] : memref<1x2x8x128xf32, #tpu.memory_space<vmem>>, vector<1x1x8x128xf32>
      %17 = vector.shape_cast %16 : vector<1x1x8x128xf32> to vector<8x128xf32>
      %18 = vector.shape_cast %15 : vector<8x128xf32> to vector<1x1x8x128xf32>
      tpu.vector_store %arg4[%c0_12, %c1, %c0_13, %c0_14], %18 {strides = array<i32>} : memref<1x2x8x128xf32, #tpu.memory_space<vmem>>, vector<1x1x8x128xf32>,
    } else {
    }
    return
  }
  func.func @transform_0(%arg0: i32, %arg1: i32) -> (i32, i32) {
    %c1_i32 = arith.constant 1 : i32
    %0 = arith.muli %arg0, %c1_i32 : i32
    %1 = arith.addi %0, %arg1 : i32
    %c0_i32 = arith.constant 0 : i32
    %2 = arith.minsi %1, %c0_i32 : i32
    %c0_i32_0 = arith.constant 0 : i32
    %c0_i32_1 = arith.constant 0 : i32
    return %2, %c0_i32_0 : i32, i32
  }
  func.func @transform_1(%arg0: i32, %arg1: i32) -> (i32, i32) {
    %c1_i32 = arith.constant 1 : i32
    %0 = arith.muli %arg0, %c1_i32 : i32
    %1 = arith.addi %0, %arg1 : i32
    %c0_i32 = arith.constant 0 : i32
    %2 = arith.minsi %1, %c0_i32 : i32
    %c0_i32_0 = arith.constant 0 : i32
    %c0_i32_1 = arith.constant 0 : i32
    return %2, %c0_i32_0 : i32, i32
  }
  func.func @transform_2(%arg0: i32, %arg1: i32) -> (i32, i32, i32, i32) {
    %c0_i32 = arith.constant 0 : i32
    %c0_i32_0 = arith.constant 0 : i32
    %c0_i32_1 = arith.constant 0 : i32
    %c0_i32_2 = arith.constant 0 : i32
    return %arg0, %c0_i32, %c0_i32_0, %c0_i32_1 : i32, i32, i32, i32
  }
}

</mosaic_0001>

<bundles_post_ra>
// kernel: dice_loss.1
= control target key start
LH: loop header
LB: loop body
LE: loop exit
PB: predicated region body
PF: predicated region fallthrough
CT: control target
= control target key end

     0   :  { %s172_s0 = inlined_call_operand.vmem [shape: f32[16,128], index: 0, kind: input, shape index: {}]   ;;  %s173_s1 = inlined_call_operand.vmem [shape: f32[16,128], index: 1, kind: input, shape index: {}]   ;;  %s174_s2 = inlined_call_operand.vmem [shape: f32[1,2,8,128], index: 2, kind: output, shape index: {}]  }
   0x1   :  { %v86_v0 = vld [vmem:[%s172_s0] sm:$0xff]  ;;  %v87_v1 = vld [vmem:[%s172_s0 + $0x8] sm:$0xff] }
   0x2   :  { %v90_v2 = vmul.f32 0.5, %v86_v0  ;;  %v91_v3 = vmul.f32 0.5, %v87_v1  ;;  %v88_v7 = vld [vmem:[%s173_s1] sm:$0xff]  ;;  %v89_v9 = vld [vmem:[%s173_s1 + $0x8] sm:$0xff] }
   0x4   :  { %135 = vtanh.f32 %v90_v2 }
   0x5   :  { %137 = vtanh.f32 %v91_v3 }
   0xe   :  { %v136_v4 = vpop.eup %135 }
   0xf   :  { %v138_v5 = vpop.eup %137  ;;  %v94_v6 = vmul.f32 0.5, %v136_v4 }
  0x10   :  { %v95_v8 = vmul.f32 0.5, %v138_v5 }
  0x11   :  { %v96_v10 = vadd.f32 0.5, %v94_v6 }
  0x12   :  { %v97_v11 = vadd.f32 0.5, %v95_v8 }
  0x13   :  { %v98_v12 = vmul.f32 %v96_v10, %v88_v7  ;;  %v100_v13 = vadd.f32 %v96_v10, %v88_v7 }
  0x14   :  { %v99_v14 = vmul.f32 %v97_v11, %v89_v9  ;;  %v101_v15 = vadd.f32 %v97_v11, %v89_v9 }
  0x16   :  { %v103_v16 = vadd.f32 %v99_v14, %v98_v12  ;;  %v107_v17 = vadd.f32 %v101_v15, %v100_v13 }
  0x18   :  { %114 = vst [vmem:[%s174_s2] sm:$0xff] %v103_v16  ;;  %134 = vst [vmem:[%s174_s2 + $0x8] sm:$0xff] %v107_v17 }

</bundles_post_ra>
